<compile_context>
chip_gen: v7x
topology: tpu7x:2x2x1
jax: 0.10.0
libtpu: 0.0.40
codegen_flags: <defaults>
</compile_context>

<pallas_src>
import jax
import jax.numpy as jnp
from jax.experimental import pallas as pl
from jax.experimental.pallas import tpu as pltpu


# ~2 MiB of data per pipeline buffer: 2 inputs/outputs x 2 (double buffering)
# stays ~8 MiB, which fits every generation's default scoped VMEM limit.
_TARGET_BLOCK_BYTES = 2 << 20


def _sublane_pack(dtype) -> int:
    """Rows per (8,128) VMEM tile for this dtype (8 f32, 16 bf16, 32 int8)."""
    itemsize = jnp.dtype(dtype).itemsize
    return max(8, 32 // itemsize)


def _drop_path_kernel_scalar_scale(scale_ref, x_ref, o_ref):
    # scale_ref: (B,) f32 in SMEM (scalar-prefetched) -- 0.0 or 1/keep_prob.
    # x_ref / o_ref: (1, bm, W) sublane- and lane-dense tiles.
    s = scale_ref[pl.program_id(0)].astype(x_ref.dtype)
    o_ref[...] = x_ref[...] * s


def _drop_path_kernel_vector_scale(scale_ref, x_ref, o_ref):
    # scale_ref: (bt, 1) per-sample scale in x.dtype; broadcasts over lanes.
    # x_ref / o_ref: (bt, bn) tiles (several fused samples per block).
    o_ref[...] = x_ref[...] * scale_ref[...]


def drop_path_pallas(x, drop_prob: float = 0.0, training: bool = False, seed: int = 0):
    """Exact semantics of timm / Swin drop_path: identity when drop_prob==0 or eval."""
    if drop_prob == 0.0 or not training:
        return x
    keep_prob = 1.0 - drop_prob

    B = x.shape[0]
    N = 1
    for d in x.shape[1:]:
        N *= d

    itemsize = jnp.dtype(x.dtype).itemsize
    sub = _sublane_pack(x.dtype)

    # Per-sample mask computed once outside the kernel (timm recipe:
    # floor(keep_prob + U[0,1)) -> {0,1}; output = x / keep_prob * mask).
    key = jax.random.PRNGKey(seed)
    u = jax.random.uniform(key, (B,), dtype=jnp.float32)
    mask = jnp.floor(jnp.float32(keep_prob) + u)
    scale_f32 = mask / jnp.float32(keep_prob)          # (B,), 0.0 or 1/keep_prob

    # ---------------------------------------------------------------- path A:
    # N is a multiple of 128 -> view as (B, M, W) with lane-dense W and
    # sublane-dense bm; per-sample scale goes to SMEM via scalar prefetch.
    if N % 128 == 0:
        m0 = N // 128
        f = 1
        for cand in range(min(8, m0), 0, -1):          # largest W = 128*f <= 1024
            if m0 % cand == 0:
                f = cand
                break
        W = 128 * f
        M = N // W

        row_bytes = W * itemsize
        bm_cap = max(sub, (_TARGET_BLOCK_BYTES // row_bytes) // sub * sub)
        if M <= bm_cap:
            bm = M                                     # full extent (exempt from /8 rule)
        else:
            bm = 0
            c = (bm_cap // sub) * sub                  # prefer a divisor of M -> no ragged tiles
            while c >= sub:
                if M % c == 0:
                    bm = c
                    break
                c -= sub
            if bm == 0:
                bm = (bm_cap // sub) * sub             # ragged last tile (masked writes)

        # v7x megacore: keep >=2 steps on a parallel axis when B == 1.
        if B == 1 and M >= 2 * sub and pl.cdiv(M, bm) < 2:
            half = ((M + 1) // 2 + sub - 1) // sub * sub
            bm = min(bm, half)

        grid = (B, pl.cdiv(M, bm))
        out3d = pl.pallas_call(
            _drop_path_kernel_scalar_scale,
            out_shape=jax.ShapeDtypeStruct((B, M, W), x.dtype),
            grid_spec=pltpu.PrefetchScalarGridSpec(
                num_scalar_prefetch=1,
                grid=grid,
                in_specs=[pl.BlockSpec((1, bm, W), lambda i, j, scale: (i, j, 0))],
                out_specs=pl.BlockSpec((1, bm, W), lambda i, j, scale: (i, j, 0)),
            ),
            compiler_params=pltpu.CompilerParams(
                dimension_semantics=("parallel", "parallel")),
        )(scale_f32, x.reshape(B, M, W))
        return out3d.reshape(x.shape)

    # ---------------------------------------------------------------- path B:
    # General 2-D fallback (small or non-128-aligned N): fuse samples per block.
    # TODO(synk): for huge non-128-aligned N with tiny B this path is sublane-
    # padded; padding N up to a multiple of 128 would fix it at the cost of a copy.
    if N * itemsize <= _TARGET_BLOCK_BYTES:
        bn = N                                         # full extent on the lane dim
    else:
        bn = max(128, (_TARGET_BLOCK_BYTES // (sub * itemsize)) // 128 * 128)
        bn = min(bn, N)

    rows_fit = max(1, _TARGET_BLOCK_BYTES // max(1, bn * itemsize))
    if rows_fit >= B:
        bt = B                                         # full extent on the sublane dim
    else:
        bt = min(B, max(sub, (rows_fit // sub) * sub))
    # v7x megacore: split the batch axis when it is large enough.
    if bt == B and B >= 2 * sub:
        bt = ((B + 1) // 2 + sub - 1) // sub * sub

    grid = (pl.cdiv(B, bt), pl.cdiv(N, bn))
    scale2d = scale_f32.astype(x.dtype).reshape(B, 1)

    out2d = pl.pallas_call(
        _drop_path_kernel_vector_scale,
        out_shape=jax.ShapeDtypeStruct((B, N), x.dtype),
        grid=grid,
        in_specs=[
            pl.BlockSpec((bt, 1), lambda i, j: (i, 0)),    # per-sample scale
            pl.BlockSpec((bt, bn), lambda i, j: (i, j)),   # fused-sample tile
        ],
        out_specs=pl.BlockSpec((bt, bn), lambda i, j: (i, j)),
        compiler_params=pltpu.CompilerParams(
            dimension_semantics=("parallel", "parallel")),
    )(scale2d, x.reshape(B, N))
    return out2d.reshape(x.shape)


if __name__ == "__main__":
    key = jax.random.PRNGKey(0)
    k1, k2 = jax.random.split(key)

    ok = True

    # Main (lane-aligned) path: B=2, L=8, C=32 -> N=256 (multiple of 128).
    B, L, C = 2, 8, 32
    x = jax.random.normal(k1, (B, L, C), dtype=jnp.float32)
    drop_prob = 0.5
    keep_prob = 1.0 - drop_prob
    out = jax.block_until_ready(
        drop_path_pallas(x, drop_prob=drop_prob, training=True, seed=0))
    for b in range(B):
        zeroed = bool(jnp.allclose(out[b], 0.0, atol=1e-6))
        scaled = bool(jnp.allclose(out[b], x[b] / keep_prob, atol=1e-5, rtol=1e-5))
        ok = ok and (zeroed or scaled)

    # Fallback path: non-128-aligned feature count.
    x2 = jax.random.normal(k2, (4, 7, 5), dtype=jnp.float32)
    kp2 = 0.75
    out2 = jax.block_until_ready(
        drop_path_pallas(x2, drop_prob=0.25, training=True, seed=7))
    for b in range(4):
        zeroed = bool(jnp.allclose(out2[b], 0.0, atol=1e-6))
        scaled = bool(jnp.allclose(out2[b], x2[b] / kp2, atol=1e-5, rtol=1e-5))
        ok = ok and (zeroed or scaled)

    # Identity paths: eval mode and drop_prob == 0.
    ok = ok and bool(jnp.allclose(drop_path_pallas(x, drop_prob, training=False), x))
    ok = ok and bool(jnp.allclose(drop_path_pallas(x, 0.0, training=True), x))

    if ok:
        print("KERNEL_OK")
    else:
        raise SystemExit("drop_path kernel produced unexpected values")
</pallas_src>

<mosaic_0001>
module attributes {stable_mosaic.version = 11 : i64} {
  func.func @_drop_path_kernel_scalar_scale(%arg0: i32, %arg1: i32, %arg2: memref<2xf32, #tpu.memory_space<smem>>, %arg3: memref<1x1x256xf32, #tpu.memory_space<vmem>>, %arg4: memref<1x1x256xf32, #tpu.memory_space<vmem>>) attributes {dimension_semantics = [#tpu.dimension_semantics<parallel>, #tpu.dimension_semantics<parallel>], iteration_bounds = array<i64: 2, 1>, scalar_prefetch = 1 : i64, scratch_operands = 0 : i64, tpu.core_type = #tpu.core_type<tc>, window_params = [{transform_indices = @transform_0, window_bounds = array<i64: 1, 1, 256>}, {transform_indices = @transform_1, window_bounds = array<i64: 1, 1, 256>}]} {
    %0 = arith.index_cast %arg0 : i32 to index
    %1 = memref.load %arg2[%0] : memref<2xf32, #tpu.memory_space<smem>>
    %c0 = arith.constant 0 : index
    %c0_0 = arith.constant 0 : index
    %c0_1 = arith.constant 0 : index
    %2 = vector.load %arg3[%c0, %c0_0, %c0_1] : memref<1x1x256xf32, #tpu.memory_space<vmem>>, vector<1x1x256xf32>
    %3 = vector.broadcast %1 : f32 to vector<1x1x256xf32>
    %4 = arith.mulf %2, %3 : vector<1x1x256xf32>
    %c0_2 = arith.constant 0 : index
    %c0_3 = arith.constant 0 : index
    %c0_4 = arith.constant 0 : index
    %5 = vector.load %arg4[%c0_2, %c0_3, %c0_4] : memref<1x1x256xf32, #tpu.memory_space<vmem>>, vector<1x1x256xf32>
    tpu.vector_store %arg4[%c0_2, %c0_3, %c0_4], %4 {strides = array<i32>} : memref<1x1x256xf32, #tpu.memory_space<vmem>>, vector<1x1x256xf32>,
    return
  }
  func.func @transform_0(%arg0: i32, %arg1: i32, %arg2: memref<2xf32, #tpu.memory_space<smem>>) -> (i32, i32, i32) {
    %c0_i32 = arith.constant 0 : i32
    %c0_i32_0 = arith.constant 0 : i32
    return %arg0, %arg1, %c0_i32 : i32, i32, i32
  }
  func.func @transform_1(%arg0: i32, %arg1: i32, %arg2: memref<2xf32, #tpu.memory_space<smem>>) -> (i32, i32, i32) {
    %c0_i32 = arith.constant 0 : i32
    %c0_i32_0 = arith.constant 0 : i32
    return %arg0, %arg1, %c0_i32 : i32, i32, i32
  }
}

</mosaic_0001>

<bundles_post_ra>
// kernel: tpu_custom_call.1
= control target key start
LH: loop header
LB: loop body
LE: loop exit
PB: predicated region body
PF: predicated region fallthrough
CT: control target
= control target key end

     0   :  { %s675_s0 = inlined_call_operand.hbm [shape: f32[2], index: 0, kind: input, shape index: {}]   ;;  %s676_s1 = inlined_call_operand.hbm [shape: f32[2,1,256], index: 1, kind: input, shape index: {}]   ;;  %s677_s2 = inlined_call_operand.hbm [shape: f32[2,1,256], index: 2, kind: output, shape index: {}]  }
   0x1   :  { %s346_s11 = scalar_lea.hbm %s675_s0, 16 }
   0x2   :  { %p347_p0 = scmp.ne.s32.totalorder %s675_s0, %s346_s11  ;;  %p350_p1 = scmp.lt.u32.totalorder %s346_s11, %s675_s0 }
   0x4   :  { %p352_p2 = pnand %p350_p1, %p347_p0 }
   0x6   :  { %355 = shalt.err (!%p352_p2)  }
   0x7   :  { %s472_s16 = smov [#allocation3]  }
   0x8   :  { %8 = dma.hbm_to_smem %s675_s0, 16, %s472_s16, [#allocation2] }
   0x9   :  { %438 = dma.done.wait [#allocation2], 16 }
   0xa   :  { %439 = vsyncadd [#allocation2], 4294967280 }
   0xb   :  { %10 = sfence }
   0xc   :  { %11 = vsyncpa [#allocation5], 0 }
   0xd   :  { %13 = vsyncpa [#allocation5 + $0x1], 0 }
   0xe   :  { %14 = vsyncpa [#allocation6], 0 }
   0xf   :  { %16 = vsyncpa [#allocation6 + $0x1], 0  ;;  %s502_s19 = smov 0   ;;  %s504_s20 = smov 0  }
  0x10   :  { %s506_s21 = smov 0   ;;  %s508_s22 = smov 0  }
  0x11   :  { %s510_s23 = smov 0   ;;  %s512_s24 = smov 0  }
  0x12 LB: > { %s266_s0 = sadd.s32 4294967295, %s470_s24   ;;  %s267_s25 = sadd.s32 4294967294, %s470_s24   ;;  %s470_s24 = sphi %s512_s24, %s22_s24   ;;  %s466_s23 = sphi %s510_s23, %s693_s23   ;;  %s462_s22 = sphi %s508_s22, %s692_s22   ;;  %s458_s21 = sphi %s506_s21, %s691_s21   ;;  %s454_s20 = sphi %s504_s20, %s690_s20   ;;  %s450_s19 = sphi %s502_s19, %s689_s19  }
  0x13   : > { %s34_s26 = sadd.s32 1, %s466_s23  ;;  %s43_s27 = sadd.s32 1, %s458_s21 }
  0x14   : > { %p36_p3 = scmp.ge.s32.totalorder %s34_s26, 2  ;;  %p50_p4 = scmp.ne.s32.totalorder %s458_s21, %s454_s20 }
  0x15   : > { %p51_p5 = scmp.eq.s32.totalorder %s470_s24, 0  ;;  %p56_p6 = scmp.ne.s32.totalorder %s454_s20, %s450_s19 }
  0x16   : > { %s695_s26 = smov (%p36_p3, %s34_s26), 0  ;;  %p57_p8 = scmp.eq.s32.totalorder %s266_s0, 0 }
  0x17   : > { %p543_p7 = por %p51_p5, %p50_p4  ;;  %s38_s29 = ssub.s32 %s466_s23, %s695_s26 }
  0x18   : > { %p82_p9 = scmp.eq.s32.totalorder %s266_s0, 1  ;;  %p41_p10 = scmp.eq.s32.totalorder %s38_s29, 0 }
  0x19   : > { %p549_p11 = por %p57_p8, %p56_p6  ;;  %p88_p13 = scmp.eq.s32.totalorder %s267_s25, 1 }
  0x1a   : > { %p553_p12 = por %p82_p9, %p50_p4  ;;  %p295_p2 = scmp.lt.s32.totalorder %s470_s24, 2 }
  0x1b   : > { %s558_s4 = scalar_select %p41_p10, %s458_s21, %s43_s27  }
  0x1c   : > { %s681_s3 = scalar_select %p553_p12, 1, 0 }
  0x1d   : > { %p560_p0 = por %p88_p13, %p56_p6  ;;  %s108_s6 = sand.u32 1, %s458_s21  }
  0x1e   : > { %s270_s7 = sshll.u32 %s108_s6, 1  ;;  %s281_s8 = sshll.u32 %s466_s23, 5 }
  0x1f   : > { %s682_s5 = scalar_select %p560_p0, 1, 0 }
  0x20   : > { %s571_s11 = scalar_lea.hbm %s676_s1, %s281_s8  ;;  %s112_s12 = scalar_lea.vmem [#allocation4], %s270_s7 }
  0x21   : > { %s122_s13 = sshll.u32 %s112_s12, 4  ;;  %p577_p3 = pnand %p295_p2, %p543_p7  ;;  %s573_s13 = int_to_ptr.vmem [resolvable:$true] %s122_s13 }
  0x22   : > { %s109_s15 = scalar_lea.sflag [#allocation5], %s108_s6  ;;  %s356_s16 = scalar_lea.hbm %s571_s11, 32 }
  0x23   : > { %p357_p6 = scmp.ne.s32.totalorder %s571_s11, %s356_s16  ;;  %p358_p8 = pneg %p577_p3 }
  0x24   : > { %s361_s0 = scalar_lea.hbm %s676_s1, 64  ;;  %p362_p7 = scmp.lt.u32.totalorder %s571_s11, %s676_s1 }
  0x25   : > { %p359_p9 = pnand %p358_p8, %p357_p6  ;;  %p363_p13 = scmp.lt.u32.totalorder %s361_s0, %s356_s16 }
  0x26   : > { %p365_p1 = scmp.lt.u32.totalorder %s356_s16, %s571_s11 }
  0x27   : > { %p360_p10 = pneg %p359_p9  ;;  %p364_p2 = por %p363_p13, %p362_p7 }
  0x29   : > { %p366_p4 = por %p365_p1, %p364_p2 }
  0x2b   : > { %p367_p5 = pnand %p366_p4, %p360_p10 }
  0x2d   : > { %370 = shalt.err (!%p367_p5)
}
  0x2e   : > { %s371_s28 = scalar_lea.vmem %s573_s13, 32  ;;  %s473_s29 = smov [#allocation4]  }
  0x2f   : > { %p372_p6 = scmp.ne.s32.totalorder %s573_s13, %s371_s28  ;;  %s376_s6 = sshll.u32 %s473_s29, 4  ;;  %s377_s6 = int_to_ptr.vmem [resolvable:$false] %s376_s6 }
  0x30   : > { %s378_s7 = scalar_lea.vmem %s377_s6, 64  ;;  %p379_p12 = scmp.lt.s32.totalorder %s573_s13, %s377_s6 }
  0x31   : > { %p374_p9 = pnand %p372_p6, %p358_p8  ;;  %p380_p7 = scmp.lt.s32.totalorder %s378_s7, %s371_s28 }
  0x33   : > { %p375_p0 = pneg %p374_p9  ;;  %p381_p13 = por %p380_p7, %p379_p12 }
  0x35   : > { %p382_p1 = pnand %p381_p13, %p375_p0 }
  0x37   : > { %385 = shalt.err (!%p382_p1)
}
  0x38   : > { %290 = dma.hbm_to_vmem [thread:$0]  (!%p577_p3), %s571_s11, 32, %s573_s13, %s109_s15  }
  0x39   : > { %p684_p4 = scmp.lt.s32.totalorder %s470_s24, 3  ;;  %p685_p5 = scmp.ge.s32.totalorder %s470_s24, 1 }
  0x3b   : > { %p128_p8 = pnand %p685_p5, %p684_p4 }
  0x3c   : > { %s613_s8 = sand.u32 (!%p128_p8), 1, %s454_s20  }
  0x3d   : > { %131 = sbr.rel (%p128_p8) target bundleno = 95 (0x5f), region = 24  ;;  %s274_s9 = sshll.u32 (!%p128_p8), %s613_s8, 1 }
  0x3e   : > { %s134_s10 = scalar_lea.sflag (!%p128_p8), [#allocation5], %s613_s8  ;;  %s137_s12 = scalar_lea.vmem (!%p128_p8), [#allocation4], %s274_s9 }
  0x44   : > { %441 = dma.done.wait (%p549_p11), %s134_s10, 32  }
  0x45   : > { %443 = vsyncadd (%p549_p11), %s134_s10, 4294967264  ;;  %s156_s11 = sld [smem:[#allocation3 + %s462_s22]]  ;;  %v160_v0 = vlaneseq  ;;  %s155_s13 = scalar_lea.vmem [#allocation7], %s274_s9  ;;  %v157_v1 = vld [vmem:[%s137_s12] sm:$0x3] }
  0x46   : > { %s182_s14 = sshll.u32 %s155_s13, 4  ;;  %s282_s15 = sshll.u32 %s462_s22, 5  ;;  %s623_s14 = int_to_ptr.vmem [resolvable:$true] %s182_s14 }
  0x47   : > { %vm162_vm0 = vcmp.lt.s32.totalorder %v160_v0, 256  ;;  %s628_s30 = scalar_lea.hbm %s677_s2, %s282_s15  ;;  %s166_s18 = scalar_lea.sflag [#allocation6], %s613_s8 }
  0x48   : > { %s386_s0 = scalar_lea.vmem %s623_s14, 32  ;;  %p686_p12 = scmp.ne.s32.totalorder %s681_s3, 0 }
  0x49   : > { %p387_p11 = scmp.ne.s32.totalorder %s623_s14, %s386_s0  ;;  %s474_s22 = smov [#allocation7]  }
  0x4a   : > { %s390_s25 = sshll.u32 %s474_s22, 4  ;;  %s391_s25 = int_to_ptr.vmem [resolvable:$false] %s390_s25 }
  0x4b   : > { %v158_v2 = vstv %s156_s11  ;;  %p388_p0 = pnand %p387_p11, %p686_p12  ;;  %s392_s27 = scalar_lea.vmem %s391_s25, 64 }
  0x4c   : > { %v159_v3 = vmul.f32 %v158_v2, %v157_v1  ;;  %p393_p10 = scmp.lt.s32.totalorder %s623_s14, %s391_s25  ;;  %p394_p2 = scmp.lt.s32.totalorder %s392_s27, %s386_s0 }
  0x4d   : > { %p389_p3 = pneg %p388_p0 }
  0x4e   : > { %164 = vst.msk [vmem:[%s155_s13] sm:$0x3] %vm162_vm0, %v159_v3  ;;  %p395_p6 = por %p394_p2, %p393_p10 }
  0x50   : > { %p396_p9 = pnand %p395_p6, %p389_p3 }
  0x52   : > { %399 = shalt.err (!%p396_p9)
}
  0x53   : > { %s400_s28 = scalar_lea.hbm %s628_s30, 32  ;;  %s404_s7 = scalar_lea.hbm %s677_s2, 64 }
  0x54   : > { %p401_p7 = scmp.ne.s32.totalorder %s628_s30, %s400_s28  ;;  %p405_p4 = scmp.lt.u32.totalorder %s628_s30, %s677_s2 }
  0x55   : > { %p406_p5 = scmp.lt.u32.totalorder %s404_s7, %s400_s28  ;;  %p408_p11 = scmp.lt.u32.totalorder %s400_s28, %s628_s30 }
  0x56   : > { %p402_p13 = pnand %p401_p7, %p686_p12 }
  0x57   : > { %p407_p8 = por %p406_p5, %p405_p4 }
  0x58   : > { %p403_p1 = pneg %p402_p13 }
  0x59   : > { %p409_p0 = por %p408_p11, %p407_p8 }
  0x5b   : > { %p410_p3 = pnand %p409_p0, %p403_p1 }
  0x5d   : > { %413 = shalt.err (!%p410_p3)
}
  0x5e   : > { %285 = dma.vmem_to_hbm [thread:$0]  (%p686_p12), %s623_s14, 32, %s628_s30, %s166_s18  }
  0x5f PF: > { %s194_s10 = sand.u32 1, %s450_s19   ;;  %p687_p10 = scmp.ne.s32.totalorder %s682_s5, 0 }
  0x60   : > { %p688_p2 = scmp.ge.s32.totalorder %s470_s24, 2  ;;  %s195_s12 = scalar_lea.sflag [#allocation6], %s194_s10 }
  0x62   : > { %p292_p6 = pnand %p688_p2, %p687_p10 }
  0x64   : > { %445 = dma.done.wait (!%p292_p6), %s195_s12, 32  }
  0x65   : > { %447 = vsyncadd (!%p292_p6), %s195_s12, 4294967264  ;;  %s22_s24 = sadd.s32 1, %s470_s24   ;;  %s689_s19 = smov %s454_s20 }
  0x66   : > { %p19_p9 = scmp.ge.s32.totalorder %s22_s24, 4   ;;  %s690_s20 = smov %s458_s21 }
  0x67   : > { %s691_s21 = smov %s558_s4  ;;  %s692_s22 = smov %s466_s23 }
  0x68   : > { %s693_s23 = smov %s695_s26  ;;  %21 = sbr.rel (!%p19_p9) target bundleno = 18 (0x12), region = 69 }
  0x6f   :  { %200 = vsyncpa [#allocation5], 1 }
  0x70   :  { %202 = vsyncpa [#allocation5 + $0x1], 1 }
  0x71   :  { %203 = vsyncpa [#allocation6], 1 }
  0x72   :  { %205 = vsyncpa [#allocation6 + $0x1], 1 }

</bundles_post_ra>
